<compile_context>
chip_gen: v7x
topology: tpu7x:2x2x1
jax: 0.10.0
libtpu: 0.0.40
codegen_flags: <defaults>
</compile_context>

<pallas_src>
import functools

import jax
import jax.numpy as jnp
from jax import lax
from jax.experimental import pallas as pl
from jax.experimental.pallas import tpu as pltpu


def _ece_stats_kernel(logits_ref, labels_ref, stats_ref, *, n_bins, n_valid):
    """Writes per-block partial bin stats: (1, 3, n_bins) = (count, sum_conf, sum_acc)."""
    i = pl.program_id(0)
    block_rows, num_classes = logits_ref.shape

    logits = logits_ref[...].astype(jnp.float32)               # (tn, C)
    labels = labels_ref[...]                                    # (tn, 1) int32

    # Softmax is monotonic: no need to materialize the full softmax.
    row_max = jnp.max(logits, axis=1, keepdims=True)            # (tn, 1)
    denom = jnp.sum(jnp.exp(logits - row_max), axis=1, keepdims=True)
    conf = 1.0 / denom                                          # exact divide

    # argmax over classes with first-occurrence tie-break (matches torch.max).
    col = lax.broadcasted_iota(jnp.int32, logits.shape, 1)
    is_max = logits == row_max
    pred = jnp.min(jnp.where(is_max, col, num_classes), axis=1, keepdims=True)
    acc = (pred == labels).astype(jnp.float32)                  # (tn, 1)

    # Valid-row mask for the (possibly zero-padded) last block.
    row = lax.broadcasted_iota(jnp.int32, (block_rows, 1), 0)
    valid = ((i * block_rows + row) < n_valid).astype(jnp.float32)

    # Uniform bin boundaries generated in-kernel (n_bins is static).
    b = lax.broadcasted_iota(jnp.int32, (1, n_bins), 1).astype(jnp.float32)
    lowers = b / jnp.float32(n_bins)                            # (1, n_bins)
    uppers = (b + 1.0) / jnp.float32(n_bins)

    in_bin = jnp.logical_and(conf > lowers, conf <= uppers)
    in_bin = in_bin.astype(jnp.float32) * valid                 # (tn, n_bins)

    cnt = jnp.sum(in_bin, axis=0, keepdims=True)                # (1, n_bins)
    s_conf = jnp.sum(conf * in_bin, axis=0, keepdims=True)      # (1, n_bins)
    s_acc = jnp.sum(acc * in_bin, axis=0, keepdims=True)        # (1, n_bins)

    stats_ref[...] = jnp.concatenate([cnt, s_conf, s_acc], axis=0)[None, :, :]


def _pick_block_rows(n, c):
    """Largest row tile that keeps the VMEM working set safe on all generations."""
    padded_c = int(pl.cdiv(max(c, 1), 128)) * 128
    # ~2 MiB per f32 tile-sized buffer; with the double-buffered input tile and
    # a few in-kernel temporaries this stays well under 16 MiB (v5e default
    # scoped VMEM) and the 32 MiB default on v6e/v7x.
    budget_bytes = 2 * 1024 * 1024
    rows = budget_bytes // (padded_c * 4)
    rows = int(max(8, min(rows, 4096)))
    rows = (rows // 8) * 8                                      # sublane align
    n_rounded = int(pl.cdiv(max(n, 1), 8)) * 8
    return max(8, min(rows, n_rounded))


@functools.partial(jax.jit, static_argnames=("n_bins", "block_rows"))
def ece_loss(logits, labels, n_bins=15, block_rows=None):
    """Pallas TPU implementation of ECELoss.forward.

    logits: (N, C) float (f32 or bf16), labels: (N,) int.
    Returns shape (1,) float32, matching torch.zeros(1) accumulation.
    """
    n, c = logits.shape
    if block_rows is None:
        block_rows = _pick_block_rows(n, c)
    n_chunks = int(pl.cdiv(n, block_rows))
    padded_n = n_chunks * block_rows

    labels2d = labels.astype(jnp.int32).reshape(n, 1)
    if padded_n != n:
        logits = jnp.pad(logits, ((0, padded_n - n), (0, 0)))
        labels2d = jnp.pad(labels2d, ((0, padded_n - n), (0, 0)),
                           constant_values=-1)

    kernel = functools.partial(_ece_stats_kernel, n_bins=n_bins, n_valid=n)

    cost = pl.CostEstimate(
        flops=int(6 * padded_n * c),
        transcendentals=int(padded_n * c),
        bytes_accessed=int(padded_n * c * logits.dtype.itemsize
                           + padded_n * 4 + n_chunks * 3 * n_bins * 4),
    )

    stats = pl.pallas_call(
        kernel,
        out_shape=jax.ShapeDtypeStruct((n_chunks, 3, n_bins), jnp.float32),
        grid=(n_chunks,),
        in_specs=[
            pl.BlockSpec((block_rows, c), lambda i: (i, 0)),
            pl.BlockSpec((block_rows, 1), lambda i: (i, 0)),
        ],
        out_specs=pl.BlockSpec((1, 3, n_bins), lambda i: (i, 0, 0)),
        compiler_params=pltpu.CompilerParams(
            dimension_semantics=("parallel",),
            vmem_limit_bytes=32 * 1024 * 1024,
        ),
        cost_estimate=cost,
    )(logits, labels2d)

    # Tiny (n_bins-sized) final combine in plain JAX.
    # Note: f32 counts are exact up to ~16M samples per bin.
    totals = jnp.sum(stats, axis=0)                             # (3, n_bins)
    cnt, s_conf, s_acc = totals[0], totals[1], totals[2]
    prop = cnt / jnp.float32(n)
    safe = jnp.where(cnt > 0, cnt, 1.0)
    gap = jnp.where(cnt > 0, jnp.abs(s_conf / safe - s_acc / safe) * prop, 0.0)
    return jnp.sum(gap).reshape(1)


def _ece_reference(logits, labels, n_bins=15):
    """Pure-JAX reference mirroring the PyTorch code (for verification)."""
    softmaxes = jax.nn.softmax(logits.astype(jnp.float32), axis=1)
    confidences = jnp.max(softmaxes, axis=1)
    predictions = jnp.argmax(softmaxes, axis=1)
    accuracies = (predictions == labels).astype(jnp.float32)
    boundaries = jnp.arange(n_bins + 1, dtype=jnp.float32) / n_bins
    ece = jnp.zeros((1,), jnp.float32)
    for b in range(n_bins):
        lo, hi = boundaries[b], boundaries[b + 1]
        in_bin = jnp.logical_and(confidences > lo, confidences <= hi)
        in_bin_f = in_bin.astype(jnp.float32)
        prop = jnp.mean(in_bin_f)
        cnt = jnp.sum(in_bin_f)
        safe = jnp.where(cnt > 0, cnt, 1.0)
        acc_in = jnp.sum(accuracies * in_bin_f) / safe
        conf_in = jnp.sum(confidences * in_bin_f) / safe
        ece = ece + jnp.where(cnt > 0, jnp.abs(conf_in - acc_in) * prop, 0.0)
    return ece


if __name__ == "__main__":
    key = jax.random.PRNGKey(0)
    k1, k2, k3, k4 = jax.random.split(key, 4)

    # Small case consistent with the module's (N, C) logits / (N,) labels.
    N, C = 64, 16
    logits = jax.random.normal(k1, (N, C), dtype=jnp.float32) * 2.0
    labels = jax.random.randint(k2, (N,), 0, C, dtype=jnp.int32)
    out = jax.block_until_ready(ece_loss(logits, labels))
    ref = _ece_reference(logits, labels)
    assert out.shape == (1,)
    assert jnp.allclose(out, ref, atol=1e-5, rtol=1e-5), (out, ref)

    # Ragged case: N not a multiple of the block size exercises the padding
    # mask; C < 128 exercises lane-padded class dims.
    N2, C2 = 50, 10
    logits2 = jax.random.normal(k3, (N2, C2), dtype=jnp.float32)
    labels2 = jax.random.randint(k4, (N2,), 0, C2, dtype=jnp.int32)
    out2 = jax.block_until_ready(ece_loss(logits2, labels2))
    ref2 = _ece_reference(logits2, labels2)
    assert jnp.allclose(out2, ref2, atol=1e-5, rtol=1e-5), (out2, ref2)

    print("KERNEL_OK")
</pallas_src>

<mosaic_0001>
module attributes {stable_mosaic.version = 11 : i64} {
  func.func @_ece_stats_kernel(%arg0: i32, %arg1: memref<64x16xf32, #tpu.memory_space<vmem>>, %arg2: memref<64x1xi32, #tpu.memory_space<vmem>>, %arg3: memref<1x3x15xf32, #tpu.memory_space<vmem>>) attributes {dimension_semantics = [#tpu.dimension_semantics<parallel>], iteration_bounds = array<i64: 1>, scalar_prefetch = 0 : i64, scratch_operands = 0 : i64, tpu.core_type = #tpu.core_type<tc>, window_params = [{transform_indices = @transform_0, window_bounds = array<i64: 64, 16>}, {transform_indices = @transform_1, window_bounds = array<i64: 64, 1>}, {transform_indices = @transform_2, window_bounds = array<i64: 1, 3, 15>}]} {
    %c0 = arith.constant 0 : index
    %c0_0 = arith.constant 0 : index
    %0 = vector.load %arg1[%c0, %c0_0] : memref<64x16xf32, #tpu.memory_space<vmem>>, vector<64x16xf32>
    %c0_1 = arith.constant 0 : index
    %c0_2 = arith.constant 0 : index
    %1 = vector.load %arg2[%c0_1, %c0_2] : memref<64x1xi32, #tpu.memory_space<vmem>>, vector<64x1xi32>
    %cst = arith.constant dense<0xFF800000> : vector<64xf32>
    %2 = vector.multi_reduction <maximumf>, %0, %cst [1] : vector<64x16xf32> to vector<64xf32>
    %3 = vector.shape_cast %2 : vector<64xf32> to vector<64x1xf32>
    %4 = vector.broadcast %3 : vector<64x1xf32> to vector<64x16xf32>
    %5 = arith.subf %0, %4 : vector<64x16xf32>
    %6 = math.exp %5 : vector<64x16xf32>
    %cst_3 = arith.constant dense<0.000000e+00> : vector<64xf32>
    %7 = vector.multi_reduction <add>, %6, %cst_3 [1] : vector<64x16xf32> to vector<64xf32>
    %8 = vector.shape_cast %7 : vector<64xf32> to vector<64x1xf32>
    %cst_4 = arith.constant 1.000000e+00 : f32
    %9 = vector.broadcast %cst_4 : f32 to vector<64x1xf32>
    %10 = arith.divf %9, %8 : vector<64x1xf32>
    %11 = tpu.iota {dimensions = array<i32: 1>} : vector<64x16xi32>
    %12 = vector.broadcast %3 : vector<64x1xf32> to vector<64x16xf32>
    %13 = arith.cmpf oeq, %0, %12 : vector<64x16xf32>
    %c16_i32 = arith.constant 16 : i32
    %14 = vector.broadcast %c16_i32 : i32 to vector<64x16xi32>
    %15 = arith.select %13, %11, %14 : vector<64x16xi1>, vector<64x16xi32>
    %cst_5 = arith.constant dense<2147483647> : vector<64xi32>
    %16 = vector.multi_reduction <minsi>, %15, %cst_5 [1] : vector<64x16xi32> to vector<64xi32>
    %17 = vector.shape_cast %16 : vector<64xi32> to vector<64x1xi32>
    %18 = arith.cmpi eq, %17, %1 : vector<64x1xi32>
    %19 = arith.extui %18 : vector<64x1xi1> to vector<64x1xi32>
    %20 = arith.sitofp %19 : vector<64x1xi32> to vector<64x1xf32>
    %21 = tpu.iota {dimensions = array<i32: 0>} : vector<64x1xi32>
    %c64_i32 = arith.constant 64 : i32
    %22 = arith.muli %arg0, %c64_i32 : i32
    %23 = vector.broadcast %22 : i32 to vector<64x1xi32>
    %24 = arith.addi %23, %21 : vector<64x1xi32>
    %c64_i32_6 = arith.constant 64 : i32
    %25 = vector.broadcast %c64_i32_6 : i32 to vector<64x1xi32>
    %26 = arith.cmpi slt, %24, %25 : vector<64x1xi32>
    %27 = arith.extui %26 : vector<64x1xi1> to vector<64x1xi32>
    %28 = arith.sitofp %27 : vector<64x1xi32> to vector<64x1xf32>
    %29 = tpu.iota {dimensions = array<i32: 1>} : vector<1x15xi32>
    %30 = arith.sitofp %29 : vector<1x15xi32> to vector<1x15xf32>
    %cst_7 = arith.constant 1.500000e+01 : f32
    %31 = vector.broadcast %cst_7 : f32 to vector<1x15xf32>
    %32 = arith.divf %30, %31 : vector<1x15xf32>
    %cst_8 = arith.constant 1.000000e+00 : f32
    %33 = vector.broadcast %cst_8 : f32 to vector<1x15xf32>
    %34 = arith.addf %30, %33 : vector<1x15xf32>
    %cst_9 = arith.constant 1.500000e+01 : f32
    %35 = vector.broadcast %cst_9 : f32 to vector<1x15xf32>
    %36 = arith.divf %34, %35 : vector<1x15xf32>
    %37 = vector.broadcast %10 : vector<64x1xf32> to vector<64x15xf32>
    %38 = vector.broadcast %32 : vector<1x15xf32> to vector<64x15xf32>
    %39 = arith.cmpf ogt, %37, %38 : vector<64x15xf32>
    %40 = vector.broadcast %10 : vector<64x1xf32> to vector<64x15xf32>
    %41 = vector.broadcast %36 : vector<1x15xf32> to vector<64x15xf32>
    %42 = arith.cmpf ole, %40, %41 : vector<64x15xf32>
    %43 = arith.andi %39, %42 : vector<64x15xi1>
    %44 = arith.extui %43 : vector<64x15xi1> to vector<64x15xi32>
    %45 = arith.sitofp %44 : vector<64x15xi32> to vector<64x15xf32>
    %46 = vector.broadcast %28 : vector<64x1xf32> to vector<64x15xf32>
    %47 = arith.mulf %45, %46 : vector<64x15xf32>
    %cst_10 = arith.constant dense<0.000000e+00> : vector<15xf32>
    %48 = vector.multi_reduction <add>, %47, %cst_10 [0] : vector<64x15xf32> to vector<15xf32>
    %49 = vector.shape_cast %48 : vector<15xf32> to vector<1x15xf32>
    %50 = vector.broadcast %10 : vector<64x1xf32> to vector<64x15xf32>
    %51 = arith.mulf %50, %47 : vector<64x15xf32>
    %cst_11 = arith.constant dense<0.000000e+00> : vector<15xf32>
    %52 = vector.multi_reduction <add>, %51, %cst_11 [0] : vector<64x15xf32> to vector<15xf32>
    %53 = vector.shape_cast %52 : vector<15xf32> to vector<1x15xf32>
    %54 = vector.broadcast %20 : vector<64x1xf32> to vector<64x15xf32>
    %55 = arith.mulf %54, %47 : vector<64x15xf32>
    %cst_12 = arith.constant dense<0.000000e+00> : vector<15xf32>
    %56 = vector.multi_reduction <add>, %55, %cst_12 [0] : vector<64x15xf32> to vector<15xf32>
    %57 = vector.shape_cast %56 : vector<15xf32> to vector<1x15xf32>
    %58 = tpu.concatenate %49, %53, %57 in 0 : vector<1x15xf32>, vector<1x15xf32>, vector<1x15xf32> -> vector<3x15xf32>
    %59 = vector.shape_cast %58 : vector<3x15xf32> to vector<1x3x15xf32>
    %c0_13 = arith.constant 0 : index
    %c0_14 = arith.constant 0 : index
    %c0_15 = arith.constant 0 : index
    %60 = vector.load %arg3[%c0_13, %c0_14, %c0_15] : memref<1x3x15xf32, #tpu.memory_space<vmem>>, vector<1x3x15xf32>
    tpu.vector_store %arg3[%c0_13, %c0_14, %c0_15], %59 {strides = array<i32>} : memref<1x3x15xf32, #tpu.memory_space<vmem>>, vector<1x3x15xf32>,
    return
  }
  func.func @transform_0(%arg0: i32) -> (i32, i32) {
    %c0_i32 = arith.constant 0 : i32
    %c0_i32_0 = arith.constant 0 : i32
    return %arg0, %c0_i32 : i32, i32
  }
  func.func @transform_1(%arg0: i32) -> (i32, i32) {
    %c0_i32 = arith.constant 0 : i32
    %c0_i32_0 = arith.constant 0 : i32
    return %arg0, %c0_i32 : i32, i32
  }
  func.func @transform_2(%arg0: i32) -> (i32, i32, i32) {
    %c0_i32 = arith.constant 0 : i32
    %c0_i32_0 = arith.constant 0 : i32
    %c0_i32_1 = arith.constant 0 : i32
    return %arg0, %c0_i32, %c0_i32_0 : i32, i32, i32
  }
}

</mosaic_0001>

<bundles_post_ra>
// kernel: ece_loss.1
= control target key start
LH: loop header
LB: loop body
LE: loop exit
PB: predicated region body
PF: predicated region fallthrough
CT: control target
= control target key end

     0   :  { %vm27_vm0 = vcmask 130048   ;;  %v116_v16 = vlaneseq  ;;  %s866_s0 = inlined_call_operand.vmem [shape: f32[64,16], index: 0, kind: input, shape index: {}]   ;;  %s867_s1 = inlined_call_operand.vmem [shape: s32[64,1], index: 1, kind: input, shape index: {}]   ;;  %s868_s2 = inlined_call_operand.vmem [shape: f32[1,3,15], index: 2, kind: output, shape index: {}]  }
   0x1   :  { %v581_v0 = vld [vmem:[%s866_s0] sm:$0xff]  ;;  %v586_v1 = vld [vmem:[%s866_s0 + $0x10] sm:$0xff]  ;;  %v591_v2 = vld [vmem:[%s866_s0 + $0x8] sm:$0xff] }
   0x2   :  { %v28_v3 = vsel %vm27_vm0, %v581_v0, -inf  ;;  %v34_v4 = vsel %vm27_vm0, %v586_v1, -inf  ;;  %v600_v5 = vld [vmem:[%s866_s0 + $0x18] sm:$0xff]  ;;  %v31_v6 = vsel %vm27_vm0, %v591_v2, -inf  ;;  %v609_v8 = vld [vmem:[%s866_s0 + $0x20] sm:$0xff]  ;;  %v614_v9 = vld [vmem:[%s866_s0 + $0x28] sm:$0xff] }
   0x3   :  { %29 = vmax.xlane.f32.xlu0 %v28_v3  ;;  %35 = vmax.xlane.f32.xlu1 %v34_v4  ;;  %v37_v7 = vsel %vm27_vm0, %v600_v5, -inf  ;;  %v40_v10 = vsel %vm27_vm0, %v609_v8, -inf  ;;  %v43_v11 = vsel %vm27_vm0, %v614_v9, -inf  ;;  %v623_v12 = vld [vmem:[%s866_s0 + $0x30] sm:$0xff]  ;;  %v628_v13 = vld [vmem:[%s866_s0 + $0x38] sm:$0xff]  ;;  %v634_v17 = vand.u32 127, %v116_v16 }
   0x4   :  { %v46_v14 = vsel %vm27_vm0, %v623_v12, -inf  ;;  %v49_v15 = vsel %vm27_vm0, %v628_v13, -inf }
   0x7   :  { %32 = vmax.xlane.f32.xlu0 %v31_v6  ;;  %38 = vmax.xlane.f32.xlu1 %v37_v7 }
   0xb   :  { %41 = vmax.xlane.f32.xlu0 %v40_v10  ;;  %44 = vmax.xlane.f32.xlu1 %v43_v11 }
   0xf   :  { %47 = vmax.xlane.f32.xlu0 %v46_v14  ;;  %50 = vmax.xlane.f32.xlu1 %v49_v15 }
  0x90   :  { %v636_v18 = vpop.xlane.xlu0 %29  ;;  %v638_v19 = vpop.xlane.xlu1 %35 }
  0x91   :  { %vm118_vm1 = vcmp.eq.f32.partialorder %v581_v0, %v636_v18  ;;  %vm120_vm2 = vcmp.eq.f32.partialorder %v586_v1, %v638_v19  ;;  %v52_v59 = vsub.f32 %v581_v0, %v636_v18  ;;  %v54_v63 = vsub.f32 %v586_v1, %v638_v19 }
  0x92   :  { %v126_v20 = vsel %vm118_vm1, %v634_v17, 16  ;;  %v128_v21 = vsel %vm120_vm2, %v634_v17, 16 }
  0x93   :  { %v134_v22 = vsel %vm27_vm0, %v126_v20, 2147483647  ;;  %v164_v26 = vsel %vm27_vm0, %v128_v21, 2147483647  ;;  %v60_v6 = vmul.f32 1.442695, %v52_v59 }
  0x94   :  { %v647_v23 = vpop.xlane.xlu0 %32  ;;  %v649_v24 = vpop.xlane.xlu1 %38  ;;  %v136_v25 = vshra.s32 %v134_v22, 16  ;;  %v166_v30 = vshra.s32 %v164_v26, 16  ;;  %v135_v58 = vand.u32 65535, %v134_v22  ;;  %v165_v62 = vand.u32 65535, %v164_v26 }
  0x95   :  { %vm119_vm3 = vcmp.eq.f32.partialorder %v591_v2, %v647_v23  ;;  %vm121_vm4 = vcmp.eq.f32.partialorder %v600_v5, %v649_v24  ;;  %v53_v7 = vsub.f32 %v591_v2, %v647_v23  ;;  %v64_v0 = vmul.f32 1.442695, %v54_v63 }
  0x96   :  { %v127_v27 = vsel %vm119_vm3, %v634_v17, 16  ;;  %v138_v28 = vcvt.s32.f32 %v136_v25  ;;  %v129_v29 = vsel %vm121_vm4, %v634_v17, 16  ;;  %v168_v36 = vcvt.s32.f32 %v166_v30 }
  0x97   :  { %v149_v33 = vsel %vm27_vm0, %v127_v27, 2147483647  ;;  %v666_v34 = vsel %vm27_vm0, %v129_v29, 2147483647  ;;  %v137_v61 = vcvt.s32.f32 %v135_v58  ;;  %v167_v11 = vcvt.s32.f32 %v165_v62 }
  0x98   :  { %139 = vmin.xlane.f32.xlu0 %v138_v28  ;;  %v658_v31 = vpop.xlane.xlu0 %41  ;;  %v660_v32 = vpop.xlane.xlu1 %44  ;;  %v151_v38 = vshra.s32 %v149_v33, 16  ;;  %v181_v41 = vshra.s32 %v666_v34, 16  ;;  %v150_v4 = vand.u32 65535, %v149_v33  ;;  %v55_v14 = vsub.f32 %v600_v5, %v649_v24 }
  0x99   :  { %vm122_vm5 = vcmp.eq.f32.partialorder %v609_v8, %v658_v31  ;;  %vm123_vm6 = vcmp.eq.f32.partialorder %v614_v9, %v660_v32  ;;  %v56_v15 = vsub.f32 %v609_v8, %v658_v31  ;;  %v180_v19 = vand.u32 65535, %v666_v34 }
  0x9a   :  { %v130_v35 = vsel %vm122_vm5, %v634_v17, 16  ;;  %v131_v37 = vsel %vm123_vm6, %v634_v17, 16  ;;  %v153_v43 = vcvt.s32.f32 %v151_v38  ;;  %v183_v47 = vcvt.s32.f32 %v181_v41 }
  0x9b   :  { %v194_v42 = vsel %vm27_vm0, %v130_v35, 2147483647  ;;  %v681_v44 = vsel %vm27_vm0, %v131_v37, 2147483647  ;;  %v152_v18 = vcvt.s32.f32 %v150_v4  ;;  %529 = vpow2.f32 %v60_v6 }
  0x9c   :  { %169 = vmin.xlane.f32.xlu0 %v168_v36  ;;  %v672_v39 = vpop.xlane.xlu0 %47  ;;  %v674_v40 = vpop.xlane.xlu1 %50  ;;  %154 = vmin.xlane.f32.xlu1 %v153_v43  ;;  %v196_v48 = vshra.s32 %v194_v42, 16  ;;  %v211_v49 = vshra.s32 %v681_v44, 16  ;;  %v195_v2 = vand.u32 65535, %v194_v42  ;;  %v62_v20 = vmul.f32 1.442695, %v53_v7 }
  0x9d   :  { %vm124_vm7 = vcmp.eq.f32.partialorder %v623_v12, %v672_v39  ;;  %vm125_vm8 = vcmp.eq.f32.partialorder %v628_v13, %v674_v40  ;;  %531 = vpow2.f32 %v64_v0  ;;  %v66_v22 = vmul.f32 1.442695, %v55_v14 }
  0x9e   :  { %v132_v45 = vsel %vm124_vm7, %v634_v17, 16  ;;  %v133_v46 = vsel %vm125_vm8, %v634_v17, 16  ;;  %v198_v51 = vcvt.s32.f32 %v196_v48  ;;  %v695_v54 = vcvt.s32.f32 %v211_v49 }
  0x9f   :  { %v689_v50 = vsel %vm27_vm0, %v132_v45, 2147483647  ;;  %v693_v53 = vsel %vm27_vm0, %v133_v46, 2147483647  ;;  %v68_v23 = vmul.f32 1.442695, %v56_v15  ;;  %v57_v5 = vsub.f32 %v614_v9, %v660_v32 }
  0xa0   :  { %v226_v52 = vshra.s32 %v689_v50, 16  ;;  %184 = vmin.xlane.f32.xlu1 %v183_v47  ;;  %199 = vmin.xlane.f32.xlu0 %v198_v51  ;;  %v241_v56 = vshra.s32 %v693_v53, 16  ;;  %v182_v25 = vcvt.s32.f32 %v180_v19  ;;  %v197_v26 = vcvt.s32.f32 %v195_v2  ;;  %v21_v15 = vld [vmem:[%s867_s1 + $0x10] sm:$0xff] }
  0xa1   :  { %v210_v27 = vand.u32 65535, %v681_v44  ;;  %533 = vpow2.f32 %v62_v20  ;;  %v58_v29 = vsub.f32 %v623_v12, %v672_v39  ;;  %v70_v31 = vmul.f32 1.442695, %v57_v5  ;;  %v20_v20 = vld [vmem:[%s867_s1 + $0x8] sm:$0xff] }
  0xa2   :  { %v697_v55 = vcvt.s32.f32 %v226_v52  ;;  %v702_v57 = vcvt.s32.f32 %v241_v56  ;;  %535 = vpow2.f32 %v66_v22  ;;  %v59_v37 = vsub.f32 %v628_v13, %v674_v40 }
  0xa3   :  { %537 = vpow2.f32 %v68_v23  ;;  %v212_v34 = vcvt.s32.f32 %v210_v27  ;;  %v72_v12 = vmul.f32 1.442695, %v58_v29  ;;  %v562_v22 = vmov 0.0  }
  0xa4   :  { %214 = vmin.xlane.f32.xlu1 %v695_v54  ;;  %229 = vmin.xlane.f32.xlu0 %v697_v55  ;;  %539 = vpow2.f32 %v70_v31  ;;  %v74_v45 = vmul.f32 1.442695, %v59_v37 }
  0xa5   :  { %v530_v41 = vpop.eup %529  ;;  %541 = vpow2.f32 %v72_v12 }
  0xa6   :  { %v76_v40 = vsel %vm27_vm0, %v530_v41, 0.0  ;;  %543 = vpow2.f32 %v74_v45 }
  0xa7   :  { %v532_v44 = vpop.eup %531 }
  0xa8   :  { %244 = vmin.xlane.f32.xlu1 %v702_v57 }
  0xab   :  { %v534_v46 = vpop.eup %533 }
  0xac   :  { %v79_v49 = vsel %vm27_vm0, %v534_v46, 0.0 }
 0x125   :  { %v707_v60 = vpop.xlane.xlu0 %139 }
 0x126   :  { %vm141_vm9 = vcmp.eq.f32.partialorder %v138_v28, %v707_v60  ;;  %v225_v28 = vand.u32 65535, %v689_v50  ;;  %v82_v50 = vsel %vm27_vm0, %v532_v44, 0.0 }
 0x127   :  { %v142_v3 = vsel %vm141_vm9, %v137_v61, inf  ;;  %v146_v61 = vcvt.f32.s32 %v707_v60  ;;  %v19_v60 = vld [vmem:[%s867_s1] sm:$0xff] }
 0x128   :  { %143 = vmin.xlane.f32.xlu0 %v142_v3  ;;  %v227_v35 = vcvt.s32.f32 %v225_v28 }
 0x129   :  { %v714_v10 = vpop.xlane.xlu0 %169  ;;  %v721_v16 = vpop.xlane.xlu1 %154  ;;  %v147_v4 = vshll.u32 %v146_v61, 16 }
 0x12a   :  { %vm171_vm10 = vcmp.eq.f32.partialorder %v168_v36, %v714_v10  ;;  %vm156_vm11 = vcmp.eq.f32.partialorder %v153_v43, %v721_v16  ;;  %v240_v36 = vand.u32 65535, %v693_v53  ;;  %v176_v63 = vcvt.f32.s32 %v714_v10 }
 0x12b   :  { %v172_v1 = vsel %vm171_vm10, %v167_v11, inf  ;;  %v157_v21 = vsel %vm156_vm11, %v152_v18, inf  ;;  %v161_v6 = vcvt.f32.s32 %v721_v16 }
 0x12c   :  { %173 = vmin.xlane.f32.xlu0 %v172_v1  ;;  %158 = vmin.xlane.f32.xlu1 %v157_v21  ;;  %v242_v43 = vcvt.s32.f32 %v240_v36  ;;  %v177_v11 = vshll.u32 %v176_v63, 16 }
 0x12d   :  { %v727_v8 = vpop.xlane.xlu1 %184  ;;  %v729_v24 = vpop.xlane.xlu0 %199  ;;  %v162_v2 = vshll.u32 %v161_v6, 16 }
 0x12e   :  { %vm186_vm12 = vcmp.eq.f32.partialorder %v183_v47, %v727_v8  ;;  %vm201_vm13 = vcmp.eq.f32.partialorder %v198_v51, %v729_v24  ;;  %v536_v47 = vpop.eup %535  ;;  %v191_v1 = vcvt.f32.s32 %v727_v8  ;;  %v206_v18 = vcvt.f32.s32 %v729_v24 }
 0x12f   :  { %v187_v9 = vsel %vm186_vm12, %v182_v25, inf  ;;  %v202_v30 = vsel %vm201_vm13, %v197_v26, inf  ;;  %v538_v48 = vpop.eup %537  ;;  %v85_v52 = vsel %vm27_vm0, %v536_v47, 0.0 }
 0x130   :  { %188 = vmin.xlane.f32.xlu1 %v187_v9  ;;  %203 = vmin.xlane.f32.xlu0 %v202_v30  ;;  %v540_v51 = vpop.eup %539  ;;  %v88_v53 = vsel %vm27_vm0, %v538_v48, 0.0  ;;  %v192_v5 = vshll.u32 %v191_v1, 16  ;;  %v207_v8 = vshll.u32 %v206_v18, 16  ;;  %v22_v30 = vld [vmem:[%s867_s1 + $0x18] sm:$0xff] }
 0x131   :  { %v737_v32 = vpop.xlane.xlu1 %214  ;;  %v739_v33 = vpop.xlane.xlu0 %229  ;;  %v91_v56 = vsel %vm27_vm0, %v540_v51, 0.0 }
 0x132   :  { %vm216_vm14 = vcmp.eq.f32.partialorder %v695_v54, %v737_v32  ;;  %vm231_vm15 = vcmp.eq.f32.partialorder %v697_v55, %v739_v33  ;;  %v542_v54 = vpop.eup %541  ;;  %v561_v55 = vmov 0   ;;  %v221_v26 = vcvt.f32.s32 %v737_v32  ;;  %v23_v32 = vld [vmem:[%s867_s1 + $0x20] sm:$0xff] }
 0x133   :  { %v217_v38 = vsel %vm216_vm14, %v212_v34, inf  ;;  %v232_v39 = vsel %vm231_vm15, %v227_v35, inf  ;;  %528 = vset.pattern.permute.xlu1 %v561_v55  ;;  %522 = vset.pattern.permute.xlu0 %v561_v55  ;;  %v544_v58 = vpop.eup %543 }
 0x134   :  { %218 = vmin.xlane.f32.xlu1 %v217_v38  ;;  %233 = vmin.xlane.f32.xlu0 %v232_v39  ;;  %v97_v59 = vsel %vm27_vm0, %v544_v58, 0.0  ;;  %v222_v37 = vshll.u32 %v221_v26, 16  ;;  %v236_v38 = vcvt.f32.s32 %v739_v33  ;;  %v321_v58 = vcvt.s32.f32 %v634_v17 }
 0x135   :  { %v748_v42 = vpop.xlane.xlu1 %244 }
 0x136   :  { %vm246_vm1 = vcmp.eq.f32.partialorder %v702_v57, %v748_v42  ;;  %v94_v57 = vsel %vm27_vm0, %v542_v54, 0.0  ;;  %v251_v46 = vcvt.f32.s32 %v748_v42  ;;  %v26_v42 = vld [vmem:[%s867_s1 + $0x38] sm:$0xff]  ;;  %v324_v61 = vadd.f32 1.0, %v321_v58 }
 0x137   :  { %v247_v13 = vsel %vm246_vm1, %v242_v43, inf }
 0x138   :  { %248 = vmin.xlane.f32.xlu1 %v247_v13  ;;  %77 = vadd.xlane.f32.xlu0 %v76_v40  ;;  %v24_v13 = vld [vmem:[%s867_s1 + $0x28] sm:$0xff]  ;;  %v237_v40 = vshll.u32 %v236_v38, 16 }
 0x13c   :  { %80 = vadd.xlane.f32.xlu1 %v79_v49  ;;  %83 = vadd.xlane.f32.xlu0 %v82_v50  ;;  %v25_v49 = vld [vmem:[%s867_s1 + $0x30] sm:$0xff]  ;;  %v252_v50 = vshll.u32 %v251_v46, 16 }
 0x140   :  { %86 = vadd.xlane.f32.xlu1 %v85_v52  ;;  %89 = vadd.xlane.f32.xlu0 %v88_v53 }
 0x144   :  { %92 = vadd.xlane.f32.xlu1 %v91_v56  ;;  %95 = vadd.xlane.f32.xlu0 %v94_v57 }
 0x148   :  { %98 = vadd.xlane.f32.xlu1 %v97_v59 }
 0x1b5   :  { %v144_v62 = vpop.xlane.xlu0 %143 }
 0x1b6   :  { %v145_v3 = vcvt.f32.s32 %v144_v62 }
 0x1b8   :  { %v148_v14 = vadd.s32 %v147_v4, %v145_v3  ;;  %v801_v3 = vmul.f32 0.06666667, %v321_v58  ;;  %v803_v4 = vmul.f32 0.06666667, %v324_v61 }
 0x1b9   :  { %v174_v7 = vpop.xlane.xlu0 %173  ;;  %v159_v10 = vpop.xlane.xlu1 %158 }
 0x1ba   :  { %v175_v0 = vcvt.f32.s32 %v174_v7  ;;  %v160_v16 = vcvt.f32.s32 %v159_v10  ;;  %vm254_vm2 = vcmp.eq.s32.totalorder %v148_v14, %v19_v60 }
 0x1bb   :  { %v504_v29 = vsel %vm254_vm2, 1.0, %v562_v22 }
 0x1bc   :  { %v178_v19 = vadd.s32 %v177_v11, %v175_v0  ;;  %v163_v21 = vadd.s32 %v162_v2, %v160_v16 }
 0x1bd   :  { %v189_v24 = vpop.xlane.xlu1 %188  ;;  %v204_v25 = vpop.xlane.xlu0 %203 }
 0x1be   :  { %vm256_vm0 = vcmp.eq.s32.totalorder %v178_v19, %v21_v15  ;;  %vm255_vm3 = vcmp.eq.s32.totalorder %v163_v21, %v20_v20  ;;  %v190_v27 = vcvt.f32.s32 %v189_v24  ;;  %v205_v28 = vcvt.f32.s32 %v204_v25 }
 0x1bf   :  { %v506_v23 = vsel %vm256_vm0, 1.0, %v562_v22  ;;  %v505_v9 = vsel %vm255_vm3, 1.0, %v562_v22 }
 0x1c0   :  { %437 = vperm.xlu1 %528, %v506_v23   ;;  %v193_v31 = vadd.s32 %v192_v5, %v190_v27  ;;  %v208_v34 = vadd.s32 %v207_v8, %v205_v28  ;;  %v523_v35 = vpack.i.bf16 %v505_v9, %v504_v29 }
 0x1c1   :  { %v219_v36 = vpop.xlane.xlu1 %218  ;;  %v234_v12 = vpop.xlane.xlu0 %233 }
 0x1c2   :  { %v220_v39 = vcvt.f32.s32 %v219_v36  ;;  %524 = vperm.xlu0 %522, %v523_v35   ;;  %vm257_vm4 = vcmp.eq.s32.totalorder %v193_v31, %v22_v30  ;;  %v235_v44 = vcvt.f32.s32 %v234_v12  ;;  %vm258_vm5 = vcmp.eq.s32.totalorder %v208_v34, %v23_v32 }
 0x1c3   :  { %v507_v41 = vsel %vm257_vm4, 1.0, %v562_v22  ;;  %v508_v47 = vsel %vm258_vm5, 1.0, %v562_v22  ;;  %vm374_vm5 = vcmask 121856  }
 0x1c4   :  { %v223_v43 = vadd.s32 %v222_v37, %v220_v39  ;;  %442 = vperm.xlu1 %528, %v507_v41   ;;  %v238_v33 = vadd.s32 %v237_v40, %v235_v44 }
 0x1c5   :  { %v249_v45 = vpop.xlane.xlu1 %248  ;;  %v78_v55 = vpop.xlane.xlu0 %77 }
 0x1c6   :  { %v250_v48 = vcvt.f32.s32 %v249_v45  ;;  %vm259_vm6 = vcmp.eq.s32.totalorder %v223_v43, %v24_v13  ;;  %vm260_vm7 = vcmp.eq.s32.totalorder %v238_v33, %v25_v49 }
 0x1c7   :  { %v509_v51 = vsel %vm259_vm6, 1.0, %v562_v22  ;;  %v510_v53 = vsel %vm260_vm7, 1.0, %v562_v22 }
 0x1c8   :  { %447 = vperm.xlu1 %528, %v508_v47   ;;  %v253_v52 = vadd.s32 %v252_v50, %v250_v48 }
 0x1c9   :  { %v81_v56 = vpop.xlane.xlu1 %80  ;;  %v84_v57 = vpop.xlane.xlu0 %83 }
 0x1ca   :  { %vm261_vm8 = vcmp.eq.s32.totalorder %v253_v52, %v26_v42  ;;  %545 = vrcp.f32 %v81_v56 }
 0x1cb   :  { %v511_v54 = vsel %vm261_vm8, 1.0, %v562_v22  ;;  %547 = vrcp.f32 %v78_v55 }
 0x1cc   :  { %452 = vperm.xlu1 %528, %v509_v51   ;;  %549 = vrcp.f32 %v84_v57 }
 0x1cd   :  { %v87_v59 = vpop.xlane.xlu1 %86  ;;  %v90_v63 = vpop.xlane.xlu0 %89 }
 0x1ce   :  { %551 = vrcp.f32 %v87_v59 }
 0x1cf   :  { %553 = vrcp.f32 %v90_v63 }
 0x1d0   :  { %457 = vperm.xlu1 %528, %v510_v53  }
 0x1d1   :  { %v93_v7 = vpop.xlane.xlu1 %92  ;;  %v96_v0 = vpop.xlane.xlu0 %95 }
 0x1d2   :  { %555 = vrcp.f32 %v93_v7 }
 0x1d3   :  { %557 = vrcp.f32 %v96_v0 }
 0x1d4   :  { %462 = vperm.xlu1 %528, %v511_v54   ;;  %v546_v62 = vpop.eup %545 }
 0x1d5   :  { %v548_v6 = vpop.eup %547  ;;  %vm327_vm9 = vcmp.gt.f32.partialorder %v546_v62, %v801_v3  ;;  %vm335_vm10 = vcmp.le.f32.partialorder %v546_v62, %v803_v4  ;;  %v99_v15 = vpop.xlane.xlu1 %98 }
 0x1d6   :  { %vm326_vm11 = vcmp.gt.f32.partialorder %v548_v6, %v801_v3  ;;  %vm334_vm12 = vcmp.le.f32.partialorder %v548_v6, %v803_v4  ;;  %v550_v17 = vpop.eup %549  ;;  %vm343_vm13 = vmand %vm327_vm9, %vm335_vm10  ;;  %559 = vrcp.f32 %v99_v15 }
 0x1d7   :  { %vm342_vm14 = vmand %vm326_vm11, %vm334_vm12  ;;  %vm328_vm15 = vcmp.gt.f32.partialorder %v550_v17, %v801_v3  ;;  %vm336_vm1 = vcmp.le.f32.partialorder %v550_v17, %v803_v4  ;;  %v812_v14 = vsel %vm343_vm13, 1.0, %v562_v22 }
 0x1d8   :  { %v552_v11 = vpop.eup %551  ;;  %v815_v1 = vsel %vm342_vm14, 1.0, %v562_v22  ;;  %vm344_vm3 = vmand %vm328_vm15, %vm336_vm1  ;;  %v397_v18 = vmul.f32 %v546_v62, %v812_v14  ;;  %v376_v23 = vsel %vm374_vm5, %v812_v14, 0.0 }
 0x1d9   :  { %vm329_vm0 = vcmp.gt.f32.partialorder %v552_v11, %v801_v3  ;;  %vm337_vm2 = vcmp.le.f32.partialorder %v552_v11, %v803_v4  ;;  %v554_v60 = vpop.eup %553  ;;  %v396_v10 = vmul.f32 %v548_v6, %v815_v1  ;;  %v514_v19 = vsel %vm344_vm3, 1.0, %v562_v22 }
 0x1da   :  { %vm345_vm4 = vmand %vm329_vm0, %vm337_vm2  ;;  %v405_v16 = vsel %vm374_vm5, %v397_v18, 0.0  ;;  %vm330_vm6 = vcmp.gt.f32.partialorder %v554_v60, %v801_v3  ;;  %vm338_vm7 = vcmp.le.f32.partialorder %v554_v60, %v803_v4  ;;  %v398_v21 = vmul.f32 %v550_v17, %v514_v19 }
 0x1db   :  { %v515_v20 = vsel %vm345_vm4, 1.0, %v562_v22  ;;  %v404_v5 = vsel %vm374_vm5, %v396_v10, 0.0  ;;  %v375_v24 = vsel %vm374_vm5, %v815_v1, 0.0  ;;  %vm346_vm10 = vmand %vm330_vm6, %vm338_vm7  ;;  %v378_v31 = vsel %vm374_vm5, %v514_v19, 0.0 }
 0x1dc   :  { %v556_v2 = vpop.eup %555  ;;  %v406_v8 = vadd.f32 %v405_v16, %v404_v5  ;;  %v399_v25 = vmul.f32 %v552_v11, %v515_v20  ;;  %v377_v26 = vadd.f32 %v376_v23, %v375_v24  ;;  %v407_v28 = vsel %vm374_vm5, %v398_v21, 0.0 }
 0x1dd   :  { %vm331_vm8 = vcmp.gt.f32.partialorder %v556_v2, %v801_v3  ;;  %vm339_vm9 = vcmp.le.f32.partialorder %v556_v2, %v803_v4  ;;  %v558_v27 = vpop.eup %557  ;;  %v516_v9 = vsel %vm346_vm10, 1.0, %v562_v22  ;;  %v380_v12 = vsel %vm374_vm5, %v515_v20, 0.0 }
 0x1de   :  { %vm347_vm11 = vmand %vm331_vm8, %vm339_vm9  ;;  %v408_v29 = vadd.f32 %v407_v28, %v406_v8  ;;  %v409_v34 = vsel %vm374_vm5, %v399_v25, 0.0  ;;  %v379_v35 = vadd.f32 %v378_v31, %v377_v26  ;;  %vm332_vm12 = vcmp.gt.f32.partialorder %v558_v27, %v801_v3 }
 0x1df   :  { %v517_v36 = vsel %vm347_vm11, 1.0, %v562_v22  ;;  %vm340_vm13 = vcmp.le.f32.partialorder %v558_v27, %v803_v4  ;;  %v400_v32 = vmul.f32 %v554_v60, %v516_v9  ;;  %v382_v13 = vsel %vm374_vm5, %v516_v9, 0.0 }
 0x1e0   :  { %v560_v30 = vpop.eup %559  ;;  %v410_v37 = vadd.f32 %v409_v34, %v408_v29  ;;  %v401_v38 = vmul.f32 %v556_v2, %v517_v36  ;;  %vm348_vm1 = vmand %vm332_vm12, %vm340_vm13  ;;  %v381_v39 = vadd.f32 %v380_v12, %v379_v35  ;;  %v384_v33 = vsel %vm374_vm5, %v517_v36, 0.0 }
 0x1e1   :  { %vm333_vm14 = vcmp.gt.f32.partialorder %v560_v30, %v801_v3  ;;  %vm341_vm15 = vcmp.le.f32.partialorder %v560_v30, %v803_v4  ;;  %v411_v41 = vsel %vm374_vm5, %v400_v32, 0.0  ;;  %v518_v44 = vsel %vm348_vm1, 1.0, %v562_v22 }
 0x1e2   :  { %vm349_vm0 = vmand %vm333_vm14, %vm341_vm15  ;;  %v412_v43 = vadd.f32 %v411_v41, %v410_v37  ;;  %v413_v40 = vsel %vm374_vm5, %v401_v38, 0.0  ;;  %v383_v46 = vadd.f32 %v382_v13, %v381_v39  ;;  %v402_v48 = vmul.f32 %v558_v27, %v518_v44 }
 0x1e3   :  { %v519_v47 = vsel %vm349_vm0, 1.0, %v562_v22  ;;  %v386_v22 = vsel %vm374_vm5, %v518_v44, 0.0  ;;  %vm494_vm2 = vcmask 1040384   ;;  %vm496_vm3 = vcmask 1041408  }
 0x1e4   :  { %v414_v49 = vadd.f32 %v413_v40, %v412_v43  ;;  %v403_v51 = vmul.f32 %v560_v30, %v519_v47  ;;  %v385_v53 = vadd.f32 %v384_v33, %v383_v46  ;;  %v415_v55 = vsel %vm374_vm5, %v402_v48, 0.0 }
 0x1e5   :  { %v388_v17 = vsel %vm374_vm5, %v519_v47, 0.0  ;;  %vm498_vm4 = vcmask 116736  }
 0x1e6   :  { %v416_v59 = vadd.f32 %v415_v55, %v414_v49  ;;  %v417_v61 = vsel %vm374_vm5, %v403_v51, 0.0  ;;  %v387_v4 = vadd.f32 %v386_v22, %v385_v53 }
 0x1e8   :  { %v418_v0 = vadd.f32 %v417_v61, %v416_v59  ;;  %v389_v18 = vadd.f32 %v388_v17, %v387_v4 }
 0x1ea   :  { %v419_v2 = vrot.slane %v418_v0, 4 }
 0x1ec   :  { %v420_v24 = vadd.f32 %v419_v2, %v418_v0 }
 0x1ee   :  { %v421_v29 = vrot.slane %v420_v24, 2 }
 0x23f   :  { %v438_v45 = vpop.permute.xlu1 %437 }
 0x240   :  { %v467_v56 = vmul.f32 %v514_v19, %v438_v45 }
 0x241   :  { %v525_v50 = vpop.permute.xlu0 %524 }
 0x242   :  { %v527_v52 = vunpack.i.h.bf16 %v525_v50  ;;  %v526_v42 = vunpack.i.l.bf16 %v525_v50  ;;  %v476_v11 = vsel %vm374_vm5, %v467_v56, 0.0 }
 0x243   :  { %v443_v54 = vpop.permute.xlu1 %442 }
 0x244   :  { %v466_v57 = vmul.f32 %v527_v52, %v812_v14  ;;  %v465_v58 = vmul.f32 %v526_v42, %v815_v1  ;;  %v468_v3 = vmul.f32 %v515_v20, %v443_v54  ;;  %v390_v20 = vrot.slane %v389_v18, 4 }
 0x246   :  { %v474_v62 = vsel %vm374_vm5, %v466_v57, 0.0  ;;  %v473_v63 = vsel %vm374_vm5, %v465_v58, 0.0  ;;  %v478_v15 = vsel %vm374_vm5, %v468_v3, 0.0  ;;  %v391_v26 = vadd.f32 %v390_v20, %v389_v18 }
 0x247   :  { %v475_v6 = vadd.f32 %v474_v62, %v473_v63  ;;  %v448_v7 = vpop.permute.xlu1 %447 }
 0x248   :  { %v469_v1 = vmul.f32 %v516_v9, %v448_v7  ;;  %v392_v31 = vrot.slane %v391_v26, 2 }
 0x249   :  { %v477_v14 = vadd.f32 %v476_v11, %v475_v6 }
 0x24a   :  { %v480_v16 = vsel %vm374_vm5, %v469_v1, 0.0  ;;  %v393_v32 = vadd.f32 %v392_v31, %v391_v26 }
 0x24b   :  { %v479_v60 = vadd.f32 %v478_v15, %v477_v14  ;;  %v453_v10 = vpop.permute.xlu1 %452 }
 0x24c   :  { %v470_v19 = vmul.f32 %v517_v36, %v453_v10  ;;  %v422_v36 = vadd.f32 %v421_v29, %v420_v24  ;;  %v394_v41 = vrot.slane %v393_v32, 1 }
 0x24d   :  { %v481_v21 = vadd.f32 %v480_v16, %v479_v60 }
 0x24e   :  { %v482_v5 = vsel %vm374_vm5, %v470_v19, 0.0  ;;  %v423_v38 = vrot.slane %v422_v36, 1  ;;  %v395_v13 = vadd.f32 %v394_v41, %v393_v32 }
 0x24f   :  { %v458_v23 = vpop.permute.xlu1 %457  ;;  %v483_v27 = vadd.f32 %v482_v5, %v481_v21 }
 0x250   :  { %v471_v8 = vmul.f32 %v518_v44, %v458_v23  ;;  %v424_v44 = vadd.f32 %v423_v38, %v422_v36 }
 0x252   :  { %v484_v25 = vsel %vm374_vm5, %v471_v8, 0.0  ;;  %v495_v46 = vsel %vm494_vm2, %v395_v13, %v424_v44 }
 0x253   :  { %v463_v28 = vpop.permute.xlu1 %462  ;;  %v485_v30 = vadd.f32 %v484_v25, %v483_v27 }
 0x254   :  { %v472_v9 = vmul.f32 %v519_v47, %v463_v28 }
 0x256   :  { %v486_v34 = vsel %vm374_vm5, %v472_v9, 0.0 }
 0x257   :  { %v487_v35 = vadd.f32 %v486_v34, %v485_v30 }
 0x259   :  { %v488_v12 = vrot.slane %v487_v35, 4 }
 0x25b   :  { %v489_v37 = vadd.f32 %v488_v12, %v487_v35 }
 0x25d   :  { %v490_v39 = vrot.slane %v489_v37, 2 }
 0x25f   :  { %v491_v43 = vadd.f32 %v490_v39, %v489_v37 }
 0x261   :  { %v492_v45 = vrot.slane %v491_v43, 1 }
 0x263   :  { %v493_v40 = vadd.f32 %v492_v45, %v491_v43 }
 0x265   :  { %v497_v47 = vsel %vm496_vm3, %v495_v46, %v493_v40 }
 0x266   :  { %499 = vst.msk [vmem:[%s868_s2] sm:$0x7] %vm498_vm4, %v497_v47 }

</bundles_post_ra>
